<compile_context>
chip_gen: v5e
topology: v5e:2x2
jax: 0.10.0
libtpu: 0.0.40
codegen_flags: <defaults>
</compile_context>

<pallas_src>
import functools

import jax
import jax.numpy as jnp
import numpy as np
from jax.experimental import pallas as pl
from jax.experimental.pallas import tpu as pltpu


def _row_kernel(rew_ref, s_ref, out_ref):
    """out[0, :, i] = max(0, rewards[s[i], :])  for a tile of TB indices."""
    S, A = rew_ref.shape
    s_ids = s_ref[...]                                    # (1, TB) int32
    TB = s_ids.shape[-1]
    # one-hot(s)^T : (S, TB), onehot[j, i] = (s[i] == j)
    onehot_sT = (jax.lax.broadcasted_iota(jnp.int32, (S, TB), 0)
                 == s_ids).astype(jnp.float32)
    # gathered^T = rewards^T @ onehot_sT : (A, TB)   (MXU gather, lane-dense)
    gatheredT = jax.lax.dot_general(
        rew_ref[...], onehot_sT,
        dimension_numbers=(((0,), (0,)), ((), ())),
        preferred_element_type=jnp.float32)
    out_ref[...] = jnp.maximum(gatheredT, 0.0)[None]      # (1, A, TB)


def _elem_kernel(rew_ref, s_ref, a_ref, out_ref):
    """out[0, i] = max(0, rewards[s[i], a[i]])  for a tile of TB indices."""
    S, A = rew_ref.shape
    s_ids = s_ref[...]                                    # (1, TB) int32
    a_ids = a_ref[...]                                    # (1, TB) int32
    TB = s_ids.shape[-1]
    onehot_sT = (jax.lax.broadcasted_iota(jnp.int32, (S, TB), 0)
                 == s_ids).astype(jnp.float32)
    gatheredT = jax.lax.dot_general(                      # (A, TB)
        rew_ref[...], onehot_sT,
        dimension_numbers=(((0,), (0,)), ((), ())),
        preferred_element_type=jnp.float32)
    # batched column select: one multiply + one sublane reduce per tile
    onehot_aT = (jax.lax.broadcasted_iota(jnp.int32, (A, TB), 0)
                 == a_ids).astype(jnp.float32)
    elem = jnp.sum(gatheredT * onehot_aT, axis=0, keepdims=True)   # (1, TB)
    out_ref[...] = jnp.maximum(elem, 0.0)


def _ravel(idx, dims):
    """RavelTransform.ravel: (B, len(dims)) multi-indices -> (B,) flat int32."""
    dims = tuple(int(d) for d in dims)
    strides = np.asarray(pl.strides_from_shape(dims), dtype=np.int32)
    return jnp.sum(idx.astype(jnp.int32) * strides[None, :], axis=1).astype(jnp.int32)


class TabularRewardModifier:
    """JAX/Pallas port of the tabular reward modifier (discrete state/action)."""

    def __init__(self, state_dim, action_dim):
        self.state_dim = tuple(int(d) for d in state_dim)
        self.action_dim = tuple(int(d) for d in action_dim)
        self.S = int(np.prod(self.state_dim))
        self.A = int(np.prod(self.action_dim))
        # Matches the PyTorch module: table initialized to zeros.
        self.rewards = jnp.zeros((self.S, self.A), dtype=jnp.float32)

    # ---- sizing helpers -------------------------------------------------
    def _tile(self, B):
        TB = min(512, ((B + 127) // 128) * 128)           # lane-dense, >=128
        num_tiles = (B + TB - 1) // TB
        return TB, num_tiles

    def _compiler_params(self, TB):
        # Resident table (double-buffer worst case) + one-hot + per-step tiles.
        est = (2 * self.S * self.A + self.S * TB
               + 2 * self.A * TB + 8 * TB) * 4 + (1 << 20)
        # Stay well under the smallest physical VMEM (64 MiB on v7x).
        assert est < (44 << 20), (
            "rewards table too large for the resident-in-VMEM plan")
        # TODO(synk): for huge tables, fall back to an S-tiled / DMA-gather path.
        vmem_limit = int(min(48 << 20, max(16 << 20, 2 * est)))
        return pltpu.CompilerParams(
            dimension_semantics=("parallel",),            # batch tiles independent
            vmem_limit_bytes=vmem_limit)

    def _pad_indices(self, flat, padded, num_tiles, TB):
        out = jnp.zeros((padded,), dtype=jnp.int32).at[:flat.shape[0]].set(flat)
        return out.reshape(num_tiles, TB)

    # ---- forward --------------------------------------------------------
    def __call__(self, s, a=None):
        s_flat = _ravel(s, self.state_dim)                # (B,)
        B = s_flat.shape[0]
        S, A = self.S, self.A
        TB, num_tiles = self._tile(B)
        padded = num_tiles * TB

        s_pad = self._pad_indices(s_flat, padded, num_tiles, TB)
        rew_spec = pl.BlockSpec((S, A), lambda i: (0, 0))     # resident table
        idx_spec = pl.BlockSpec((1, TB), lambda i: (i, 0))    # lane-dense indices
        params = self._compiler_params(TB)

        if a is None:
            out = pl.pallas_call(
                _row_kernel,
                out_shape=jax.ShapeDtypeStruct((num_tiles, A, TB), jnp.float32),
                grid=(num_tiles,),
                in_specs=[rew_spec, idx_spec],
                out_specs=pl.BlockSpec((1, A, TB), lambda i: (i, 0, 0)),
                compiler_params=params,
            )(self.rewards, s_pad)
            # (num_tiles, A, TB) -> (padded, A) -> (B, A)   (wrapper-side plumbing)
            return jnp.transpose(out, (0, 2, 1)).reshape(padded, A)[:B]

        a_flat = _ravel(a, self.action_dim)               # (B,)
        a_pad = self._pad_indices(a_flat, padded, num_tiles, TB)
        out = pl.pallas_call(
            _elem_kernel,
            out_shape=jax.ShapeDtypeStruct((num_tiles, TB), jnp.float32),
            grid=(num_tiles,),
            in_specs=[rew_spec, idx_spec, idx_spec],
            out_specs=pl.BlockSpec((1, TB), lambda i: (i, 0)),
            compiler_params=params,
        )(self.rewards, s_pad, a_pad)
        return out.reshape(padded)[:B].reshape(B, 1)

    def after_update(self):
        # Training-time op (post-optimizer clamp); plain jnp, not a kernel.
        self.rewards = jnp.maximum(self.rewards, 0.0)


if __name__ == "__main__":
    key = jax.random.PRNGKey(0)
    k_tab, k_s, k_a = jax.random.split(key, 3)

    state_dim = (4, 4)    # S = 16
    action_dim = (4,)     # A = 4
    B = 8

    model = TabularRewardModifier(state_dim, action_dim)
    # The torch module initializes the table to zeros (trivial all-zero output
    # after relu); install deterministic random values so the relu/gather
    # paths are actually exercised by the check below.
    model.rewards = jax.random.normal(k_tab, (model.S, model.A),
                                      dtype=jnp.float32)

    s = jax.random.randint(k_s, (B, len(state_dim)), 0,
                           jnp.asarray(state_dim, dtype=jnp.int32))
    a = jax.random.randint(k_a, (B, len(action_dim)), 0,
                           jnp.asarray(action_dim, dtype=jnp.int32))

    r_state = model(s)          # (B, A)  -- a is None path
    r_sa = model(s, a)          # (B, 1)  -- (s, a) path
    jax.block_until_ready((r_state, r_sa))

    # pure-JAX reference check
    s_flat = _ravel(s, state_dim)
    a_flat = _ravel(a, action_dim)
    ref_row = jnp.maximum(model.rewards[s_flat], 0.0)
    ref_elem = jnp.maximum(model.rewards[s_flat, a_flat], 0.0)[:, None]
    np.testing.assert_allclose(np.asarray(r_state), np.asarray(ref_row),
                               rtol=1e-6, atol=1e-6)
    np.testing.assert_allclose(np.asarray(r_sa), np.asarray(ref_elem),
                               rtol=1e-6, atol=1e-6)

    print("KERNEL_OK")
</pallas_src>

<mosaic_0001>
module attributes {stable_mosaic.version = 11 : i64} {
  func.func @_row_kernel(%arg0: i32, %arg1: memref<16x4xf32, #tpu.memory_space<vmem>>, %arg2: memref<1x128xi32, #tpu.memory_space<vmem>>, %arg3: memref<1x4x128xf32, #tpu.memory_space<vmem>>) attributes {dimension_semantics = [#tpu.dimension_semantics<parallel>], iteration_bounds = array<i64: 1>, scalar_prefetch = 0 : i64, scratch_operands = 0 : i64, tpu.core_type = #tpu.core_type<tc>, window_params = [{pipeline_mode = #tpu.pipeline_mode<synchronous>, transform_indices = @transform_0, window_bounds = array<i64: 16, 4>}, {transform_indices = @transform_1, window_bounds = array<i64: 1, 128>}, {transform_indices = @transform_2, window_bounds = array<i64: 1, 4, 128>}]} {
    %c0 = arith.constant 0 : index
    %c0_0 = arith.constant 0 : index
    %0 = vector.load %arg2[%c0, %c0_0] : memref<1x128xi32, #tpu.memory_space<vmem>>, vector<1x128xi32>
    %1 = tpu.iota {dimensions = array<i32: 0>} : vector<16x128xi32>
    %2 = vector.broadcast %0 : vector<1x128xi32> to vector<16x128xi32>
    %3 = arith.cmpi eq, %1, %2 : vector<16x128xi32>
    %4 = arith.extui %3 : vector<16x128xi1> to vector<16x128xi32>
    %5 = arith.sitofp %4 : vector<16x128xi32> to vector<16x128xf32>
    %c0_1 = arith.constant 0 : index
    %c0_2 = arith.constant 0 : index
    %6 = vector.load %arg1[%c0_1, %c0_2] : memref<16x4xf32, #tpu.memory_space<vmem>>, vector<16x4xf32>
    %cst = arith.constant dense<0.000000e+00> : vector<4x128xf32>
    %7 = tpu.matmul %6, %5, %cst {dimension_numbers = #tpu.dot_dimension_numbers<[0], [0], [1], [1], [0, 1, 1, 1], [], []>} : vector<16x4xf32>, vector<16x128xf32>, vector<4x128xf32> -> vector<4x128xf32>
    %cst_3 = arith.constant 0.000000e+00 : f32
    %8 = vector.broadcast %cst_3 : f32 to vector<4x128xf32>
    %9 = arith.maximumf %7, %8 : vector<4x128xf32>
    %10 = vector.shape_cast %9 : vector<4x128xf32> to vector<1x4x128xf32>
    %c0_4 = arith.constant 0 : index
    %c0_5 = arith.constant 0 : index
    %c0_6 = arith.constant 0 : index
    %11 = vector.load %arg3[%c0_4, %c0_5, %c0_6] : memref<1x4x128xf32, #tpu.memory_space<vmem>>, vector<1x4x128xf32>
    tpu.vector_store %arg3[%c0_4, %c0_5, %c0_6], %10 {strides = array<i32>} : memref<1x4x128xf32, #tpu.memory_space<vmem>>, vector<1x4x128xf32>,
    return
  }
  func.func @transform_0(%arg0: i32) -> (i32, i32) {
    %c0_i32 = arith.constant 0 : i32
    %c0_i32_0 = arith.constant 0 : i32
    %c0_i32_1 = arith.constant 0 : i32
    return %c0_i32, %c0_i32_0 : i32, i32
  }
  func.func @transform_1(%arg0: i32) -> (i32, i32) {
    %c0_i32 = arith.constant 0 : i32
    %c0_i32_0 = arith.constant 0 : i32
    return %arg0, %c0_i32 : i32, i32
  }
  func.func @transform_2(%arg0: i32) -> (i32, i32, i32) {
    %c0_i32 = arith.constant 0 : i32
    %c0_i32_0 = arith.constant 0 : i32
    %c0_i32_1 = arith.constant 0 : i32
    return %arg0, %c0_i32, %c0_i32_0 : i32, i32, i32
  }
}

</mosaic_0001>

<bundles_post_ra>
// kernel: tpu_custom_call.1
= control target key start
LH: loop header
LB: loop body
LE: loop exit
PB: predicated region body
PF: predicated region fallthrough
CT: control target
= control target key end

     0   :  { %v13_v1 = vlaneseq  ;;  %s163_s0 = inlined_call_operand.vmem [shape: f32[16,4], index: 0, kind: input, shape index: {}]   ;;  %s164_s1 = inlined_call_operand.vmem [shape: s32[1,128], index: 1, kind: input, shape index: {}]   ;;  %s165_s2 = inlined_call_operand.hbm [shape: f32[1,4,128], index: 2, kind: output, shape index: {}]  }
   0x1   :  { %v23_v0 = vld [vmem:[%s163_s0] sm:$0xff] }
   0x2   :  { %25 = vxpose.xlu0.b32.start [1/2] (short) (narrow) %v23_v0, 8 }
   0x3   :  { %7 = vsyncpa [#allocation3], 0  ;;  %v14_v2 = vshrl.u32 %v13_v1, 7  ;;  %v107_v3 = vld [vmem:[%s164_s1] ss:$0 sm:$0xff]  ;;  %v24_v5 = vld [vmem:[%s163_s0 + $0x8] sm:$0xff] }
   0x4   :  { %v134_v6 = vmov 1.0   ;;  %vm57_vm2 = vcmask 130048   ;;  %s135_s15 = smov [#allocation2]   ;;  %s90_s1 = sshll.u32 %s165_s2, 4  ;;  %s91_s1 = int_to_ptr.hbm [resolvable:$true] %s90_s1 }
   0x5   :  { %v15_v4 = vadd.s32 8, %v14_v2  ;;  %vm17_vm1 = vcmp.eq.s32.totalorder %v14_v2, %v107_v3  ;;  %s88_s16 = sshll.u32 %s135_s15, 4  ;;  %s89_s16 = int_to_ptr.vmem [resolvable:$true] %s88_s16 }
   0x7   :  { %vm18_vm0 = vcmp.eq.s32.totalorder %v15_v4, %v107_v3 }
   0x8   :  { %101 = vmatpush.msk.msra.mxu0 %vm18_vm0, %v134_v6 }
   0xa   :  { %26 = vxpose.xlu0.b32.end [2/2] (short) (narrow) %v24_v5, 8  ;;  %102 = vmatpush.msk.msra.mxu0 %vm17_vm1, %v134_v6 }
  0xa6   :  { %v41_v7 = vpop.trf.xlu0 }
  0xa7   :  { %103 = vmatmul.msk.f32.vlgmr.msra.gmra.mxu0 %vm57_vm2, %v41_v7 }
 0x124   :  { %v78_v8 = vpop.f32.mrf.mxu0 }
 0x125   :  { %v81_v9 = vmax.f32 %v78_v8, 0.0 }
 0x127   :  { %82 = vst [vmem:[#allocation2] sm:$0xf] %v81_v9 }
 0x128   :  { %93 = dma.vmem_to_hbm [thread:$0]  %s89_s16, 64, %s91_s1, [#allocation3]  }
 0x129   :  { %132 = dma.done.wait [#allocation3], 64  }
 0x12a   :  { %133 = vsyncadd [#allocation3], 4294967232 }
 0x12b   :  { %98 = vsyncpa [#allocation3], 1 }

</bundles_post_ra>
